<compile_context>
chip_gen: v6e
topology: v6e:2x2x1
jax: 0.10.0
libtpu: 0.0.40
codegen_flags: <defaults>
</compile_context>

<pallas_src>
import functools

import jax
import jax.numpy as jnp
from jax import lax
from jax.experimental import pallas as pl
from jax.experimental.pallas import tpu as pltpu


def _lif_fc_kernel(x_ref, w_ref, b_ref, s_ref, u_ref, p_ref, q_ref, r_ref,
                   *, alpha, beta, gamma, p_mult, q_mult, r_mult, thr):
    t = pl.program_id(1)

    @pl.when(t == 0)                      # classifier_model.state_init: zeros
    def _():
        p_ref[...] = jnp.zeros_like(p_ref)
        q_ref[...] = jnp.zeros_like(q_ref)
        r_ref[...] = jnp.zeros_like(r_ref)

    x = x_ref[0]                          # (BB, N_in) input spikes at step t

    # --- LIF trace updates (simultaneous, as in the torch tuple assignment) ---
    P_new = alpha * p_ref[...] + p_mult * q_ref[...]
    Q_new = beta * q_ref[...] + q_mult * x
    R_dec = gamma * r_ref[...]

    # --- membrane potential via MXU matmul, f32 accumulate ---
    U = jnp.dot(P_new, w_ref[...],
                precision=lax.Precision.HIGHEST,
                preferred_element_type=jnp.float32) + b_ref[...] - R_dec

    spike = U >= thr                      # SmoothStep.forward (Heaviside)
    S = spike.astype(jnp.float32)

    s_ref[0] = S
    u_ref[0] = U
    p_ref[...] = P_new
    q_ref[...] = Q_new
    r_ref[...] = jnp.where(spike, R_dec + r_mult, R_dec)
    # TODO(synk): SmoothStep's custom surrogate gradient (backward pass) is not
    # represented; only the forward pass is implemented here.


def classifier_forward(inputs_btn, weights, bias, *, alpha, beta, gamma,
                       p_mult, q_mult, r_mult, thr, batch_tile=8):
    """classifier_model.forward: inputs (B, T, N_in) -> (s_t, u_t) of (B, T, N_out)."""
    B, T, N_in = inputs_btn.shape
    N_out = weights.shape[1]
    BB = min(batch_tile, B)
    assert B % BB == 0

    x_tbn = jnp.transpose(inputs_btn, (1, 0, 2))        # time-major, lane-dense
    b2 = bias.reshape(1, N_out)

    kernel = functools.partial(
        _lif_fc_kernel, alpha=alpha, beta=beta, gamma=gamma,
        p_mult=p_mult, q_mult=q_mult, r_mult=r_mult, thr=thr)

    s_tbn, u_tbn = pl.pallas_call(
        kernel,
        out_shape=(jax.ShapeDtypeStruct((T, B, N_out), jnp.float32),   # S
                   jax.ShapeDtypeStruct((T, B, N_out), jnp.float32)),  # U
        grid=(B // BB, T),
        in_specs=[pl.BlockSpec((1, BB, N_in), lambda b, t: (t, b, 0)),   # x
                  pl.BlockSpec((N_in, N_out), lambda b, t: (0, 0)),      # weights
                  pl.BlockSpec((1, N_out), lambda b, t: (0, 0))],        # bias
        out_specs=(pl.BlockSpec((1, BB, N_out), lambda b, t: (t, b, 0)),
                   pl.BlockSpec((1, BB, N_out), lambda b, t: (t, b, 0))),
        scratch_shapes=[pltpu.VMEM((BB, N_in), jnp.float32),   # P
                        pltpu.VMEM((BB, N_in), jnp.float32),   # Q
                        pltpu.VMEM((BB, N_out), jnp.float32)], # R
        compiler_params=pltpu.CompilerParams(
            dimension_semantics=("parallel", "arbitrary")),
    )(x_tbn, weights, b2)

    s_bt = jnp.transpose(s_tbn, (1, 0, 2))              # back to (B, T, N_out)
    u_bt = jnp.transpose(u_tbn, (1, 0, 2))
    return s_bt, u_bt


if __name__ == "__main__":
    # ---- small, module-consistent shapes (lane-dense neuron dims) ----------
    B, T, N_in, N_out = 16, 8, 256, 128

    # ---- LIF hyperparameters (tau_*_low == tau_*_high -> scalar branch) ----
    delta_t = 1.0
    tau_syn, tau_mem, tau_ref = 10.0, 10.0, 5.0
    thr, gain = 0.1, 0.02
    beta = 1.0 - delta_t / tau_syn;  q_mult = 1.0 / (1.0 - beta)   # = tau_syn
    alpha = 1.0 - delta_t / tau_mem; p_mult = 1.0 / (1.0 - alpha)  # = tau_mem
    gamma = 1.0 - delta_t / tau_ref; r_mult = 1.0 / (1.0 - gamma)  # = reset

    # ---- deterministic parameter init (weights ~ U(-gain, gain), bias = 0) --
    key = jax.random.PRNGKey(0)
    kw, kx = jax.random.split(key)
    weights = jax.random.uniform(kw, (N_in, N_out), jnp.float32, -gain, gain)
    bias = jnp.zeros((N_out,), jnp.float32)   # torch uniform_(-0, 0) == zeros

    # ---- spike-like inputs over T timesteps ---------------------------------
    inputs = (jax.random.uniform(kx, (B, T, N_in)) < 0.3).astype(jnp.float32)

    fwd = jax.jit(functools.partial(
        classifier_forward, alpha=alpha, beta=beta, gamma=gamma,
        p_mult=p_mult, q_mult=q_mult, r_mult=r_mult, thr=thr))
    s_t, u_t = fwd(inputs, weights, bias)
    s_t = jax.block_until_ready(s_t)
    u_t = jax.block_until_ready(u_t)

    # ---- pure-JAX reference mirroring the PyTorch forward -------------------
    def ref_forward(x):
        P = jnp.zeros((B, N_in), jnp.float32)
        Q = jnp.zeros_like(P)
        R = jnp.zeros((B, N_out), jnp.float32)
        s_list, u_list = [], []
        for t in range(T):
            P, R, Q = (alpha * P + p_mult * Q, gamma * R,
                       beta * Q + q_mult * x[:, t, :])
            U = jnp.dot(P, weights, precision=lax.Precision.HIGHEST) + bias - R
            S = (U >= thr).astype(jnp.float32)
            R = R + S * r_mult
            s_list.append(S)
            u_list.append(U)
        return jnp.stack(s_list, 1), jnp.stack(u_list, 1)

    s_ref, u_ref = ref_forward(inputs)

    assert jnp.allclose(u_t, u_ref, atol=1e-2, rtol=2e-3), "U mismatch"
    # spikes may only differ where U is numerically at the threshold
    mism = s_t != s_ref
    assert bool(jnp.all(~mism | (jnp.abs(u_ref - thr) < 5e-2))), "S mismatch"

    # per-timestep spike_count bookkeeping as in classifier_model.forward
    spike_count = [int(v) for v in jnp.mean(jnp.sum(s_t, axis=2), axis=0)]
    assert len(spike_count) == T

    print("KERNEL_OK")
</pallas_src>

<mosaic_0001>
module attributes {stable_mosaic.version = 11 : i64} {
  func.func @_lif_fc_kernel(%arg0: i32, %arg1: i32, %arg2: memref<1x8x256xf32, #tpu.memory_space<vmem>>, %arg3: memref<256x128xf32, #tpu.memory_space<vmem>>, %arg4: memref<1x128xf32, #tpu.memory_space<vmem>>, %arg5: memref<1x8x128xf32, #tpu.memory_space<vmem>>, %arg6: memref<1x8x128xf32, #tpu.memory_space<vmem>>, %arg7: memref<8x256xf32, #tpu.memory_space<vmem>>, %arg8: memref<8x256xf32, #tpu.memory_space<vmem>>, %arg9: memref<8x128xf32, #tpu.memory_space<vmem>>) attributes {dimension_semantics = [#tpu.dimension_semantics<parallel>, #tpu.dimension_semantics<arbitrary>], iteration_bounds = array<i64: 2, 8>, scalar_prefetch = 0 : i64, scratch_operands = 3 : i64, tpu.core_type = #tpu.core_type<tc>, window_params = [{transform_indices = @transform_0, window_bounds = array<i64: 1, 8, 256>}, {pipeline_mode = #tpu.pipeline_mode<synchronous>, transform_indices = @transform_1, window_bounds = array<i64: 256, 128>}, {pipeline_mode = #tpu.pipeline_mode<synchronous>, transform_indices = @transform_2, window_bounds = array<i64: 1, 128>}, {transform_indices = @transform_3, window_bounds = array<i64: 1, 8, 128>}, {transform_indices = @transform_4, window_bounds = array<i64: 1, 8, 128>}]} {
    %c0_i32 = arith.constant 0 : i32
    %0 = arith.cmpi eq, %arg1, %c0_i32 : i32
    %1 = arith.extui %0 : i1 to i32
    %c0_i32_0 = arith.constant 0 : i32
    %2 = arith.cmpi ne, %1, %c0_i32_0 : i32
    scf.if %2 {
      %cst_34 = arith.constant 0.000000e+00 : f32
      %43 = vector.broadcast %cst_34 : f32 to vector<8x256xf32>
      %c0_35 = arith.constant 0 : index
      %c0_36 = arith.constant 0 : index
      %44 = vector.load %arg7[%c0_35, %c0_36] : memref<8x256xf32, #tpu.memory_space<vmem>>, vector<8x256xf32>
      tpu.vector_store %arg7[%c0_35, %c0_36], %43 {strides = array<i32>} : memref<8x256xf32, #tpu.memory_space<vmem>>, vector<8x256xf32>,
      %cst_37 = arith.constant 0.000000e+00 : f32
      %45 = vector.broadcast %cst_37 : f32 to vector<8x256xf32>
      %c0_38 = arith.constant 0 : index
      %c0_39 = arith.constant 0 : index
      %46 = vector.load %arg8[%c0_38, %c0_39] : memref<8x256xf32, #tpu.memory_space<vmem>>, vector<8x256xf32>
      tpu.vector_store %arg8[%c0_38, %c0_39], %45 {strides = array<i32>} : memref<8x256xf32, #tpu.memory_space<vmem>>, vector<8x256xf32>,
      %cst_40 = arith.constant 0.000000e+00 : f32
      %47 = vector.broadcast %cst_40 : f32 to vector<8x128xf32>
      %c0_41 = arith.constant 0 : index
      %c0_42 = arith.constant 0 : index
      %48 = vector.load %arg9[%c0_41, %c0_42] : memref<8x128xf32, #tpu.memory_space<vmem>>, vector<8x128xf32>
      tpu.vector_store %arg9[%c0_41, %c0_42], %47 {strides = array<i32>} : memref<8x128xf32, #tpu.memory_space<vmem>>, vector<8x128xf32>,
    } else {
    }
    %c0 = arith.constant 0 : index
    %c0_1 = arith.constant 0 : index
    %c0_2 = arith.constant 0 : index
    %3 = vector.load %arg2[%c0, %c0_1, %c0_2] : memref<1x8x256xf32, #tpu.memory_space<vmem>>, vector<1x8x256xf32>
    %4 = vector.shape_cast %3 : vector<1x8x256xf32> to vector<8x256xf32>
    %c0_3 = arith.constant 0 : index
    %c0_4 = arith.constant 0 : index
    %5 = vector.load %arg7[%c0_3, %c0_4] : memref<8x256xf32, #tpu.memory_space<vmem>>, vector<8x256xf32>
    %cst = arith.constant 0.899999976 : f32
    %6 = vector.broadcast %cst : f32 to vector<8x256xf32>
    %7 = arith.mulf %6, %5 : vector<8x256xf32>
    %c0_5 = arith.constant 0 : index
    %c0_6 = arith.constant 0 : index
    %8 = vector.load %arg8[%c0_5, %c0_6] : memref<8x256xf32, #tpu.memory_space<vmem>>, vector<8x256xf32>
    %cst_7 = arith.constant 1.000000e+01 : f32
    %9 = vector.broadcast %cst_7 : f32 to vector<8x256xf32>
    %10 = arith.mulf %9, %8 : vector<8x256xf32>
    %11 = arith.addf %7, %10 : vector<8x256xf32>
    %c0_8 = arith.constant 0 : index
    %c0_9 = arith.constant 0 : index
    %12 = vector.load %arg8[%c0_8, %c0_9] : memref<8x256xf32, #tpu.memory_space<vmem>>, vector<8x256xf32>
    %cst_10 = arith.constant 0.899999976 : f32
    %13 = vector.broadcast %cst_10 : f32 to vector<8x256xf32>
    %14 = arith.mulf %13, %12 : vector<8x256xf32>
    %cst_11 = arith.constant 1.000000e+01 : f32
    %15 = vector.broadcast %cst_11 : f32 to vector<8x256xf32>
    %16 = arith.mulf %15, %4 : vector<8x256xf32>
    %17 = arith.addf %14, %16 : vector<8x256xf32>
    %c0_12 = arith.constant 0 : index
    %c0_13 = arith.constant 0 : index
    %18 = vector.load %arg9[%c0_12, %c0_13] : memref<8x128xf32, #tpu.memory_space<vmem>>, vector<8x128xf32>
    %cst_14 = arith.constant 8.000000e-01 : f32
    %19 = vector.broadcast %cst_14 : f32 to vector<8x128xf32>
    %20 = arith.mulf %19, %18 : vector<8x128xf32>
    %c0_15 = arith.constant 0 : index
    %c0_16 = arith.constant 0 : index
    %21 = vector.load %arg3[%c0_15, %c0_16] : memref<256x128xf32, #tpu.memory_space<vmem>>, vector<256x128xf32>
    %cst_17 = arith.constant dense<0.000000e+00> : vector<8x128xf32>
    %22 = tpu.matmul %11, %21, %cst_17 {dimension_numbers = #tpu.dot_dimension_numbers<[1], [0], [0], [1], [0, 0, 1, 1], [], []>, precision = #tpu.contract_precision<fp32>} : vector<8x256xf32>, vector<256x128xf32>, vector<8x128xf32> -> vector<8x128xf32>
    %c0_18 = arith.constant 0 : index
    %c0_19 = arith.constant 0 : index
    %23 = vector.load %arg4[%c0_18, %c0_19] : memref<1x128xf32, #tpu.memory_space<vmem>>, vector<1x128xf32>
    %24 = vector.broadcast %23 : vector<1x128xf32> to vector<8x128xf32>
    %25 = arith.addf %22, %24 : vector<8x128xf32>
    %26 = arith.subf %25, %20 : vector<8x128xf32>
    %cst_20 = arith.constant 1.000000e-01 : f32
    %27 = vector.broadcast %cst_20 : f32 to vector<8x128xf32>
    %28 = arith.cmpf oge, %26, %27 : vector<8x128xf32>
    %29 = arith.extui %28 : vector<8x128xi1> to vector<8x128xi32>
    %30 = arith.sitofp %29 : vector<8x128xi32> to vector<8x128xf32>
    %c0_21 = arith.constant 0 : index
    %c0_22 = arith.constant 0 : index
    %c0_23 = arith.constant 0 : index
    %31 = vector.load %arg5[%c0_21, %c0_22, %c0_23] : memref<1x8x128xf32, #tpu.memory_space<vmem>>, vector<1x8x128xf32>
    %32 = vector.shape_cast %31 : vector<1x8x128xf32> to vector<8x128xf32>
    %33 = vector.shape_cast %30 : vector<8x128xf32> to vector<1x8x128xf32>
    tpu.vector_store %arg5[%c0_21, %c0_22, %c0_23], %33 {strides = array<i32>} : memref<1x8x128xf32, #tpu.memory_space<vmem>>, vector<1x8x128xf32>,
    %c0_24 = arith.constant 0 : index
    %c0_25 = arith.constant 0 : index
    %c0_26 = arith.constant 0 : index
    %34 = vector.load %arg6[%c0_24, %c0_25, %c0_26] : memref<1x8x128xf32, #tpu.memory_space<vmem>>, vector<1x8x128xf32>
    %35 = vector.shape_cast %34 : vector<1x8x128xf32> to vector<8x128xf32>
    %36 = vector.shape_cast %26 : vector<8x128xf32> to vector<1x8x128xf32>
    tpu.vector_store %arg6[%c0_24, %c0_25, %c0_26], %36 {strides = array<i32>} : memref<1x8x128xf32, #tpu.memory_space<vmem>>, vector<1x8x128xf32>,
    %c0_27 = arith.constant 0 : index
    %c0_28 = arith.constant 0 : index
    %37 = vector.load %arg7[%c0_27, %c0_28] : memref<8x256xf32, #tpu.memory_space<vmem>>, vector<8x256xf32>
    tpu.vector_store %arg7[%c0_27, %c0_28], %11 {strides = array<i32>} : memref<8x256xf32, #tpu.memory_space<vmem>>, vector<8x256xf32>,
    %c0_29 = arith.constant 0 : index
    %c0_30 = arith.constant 0 : index
    %38 = vector.load %arg8[%c0_29, %c0_30] : memref<8x256xf32, #tpu.memory_space<vmem>>, vector<8x256xf32>
    tpu.vector_store %arg8[%c0_29, %c0_30], %17 {strides = array<i32>} : memref<8x256xf32, #tpu.memory_space<vmem>>, vector<8x256xf32>,
    %cst_31 = arith.constant 5.000000e+00 : f32
    %39 = vector.broadcast %cst_31 : f32 to vector<8x128xf32>
    %40 = arith.addf %20, %39 : vector<8x128xf32>
    %41 = arith.select %28, %40, %20 : vector<8x128xi1>, vector<8x128xf32>
    %c0_32 = arith.constant 0 : index
    %c0_33 = arith.constant 0 : index
    %42 = vector.load %arg9[%c0_32, %c0_33] : memref<8x128xf32, #tpu.memory_space<vmem>>, vector<8x128xf32>
    tpu.vector_store %arg9[%c0_32, %c0_33], %41 {strides = array<i32>} : memref<8x128xf32, #tpu.memory_space<vmem>>, vector<8x128xf32>,
    return
  }
  func.func @transform_0(%arg0: i32, %arg1: i32) -> (i32, i32, i32) {
    %c0_i32 = arith.constant 0 : i32
    %c0_i32_0 = arith.constant 0 : i32
    return %arg1, %arg0, %c0_i32 : i32, i32, i32
  }
  func.func @transform_1(%arg0: i32, %arg1: i32) -> (i32, i32) {
    %c0_i32 = arith.constant 0 : i32
    %c0_i32_0 = arith.constant 0 : i32
    %c0_i32_1 = arith.constant 0 : i32
    return %c0_i32, %c0_i32_0 : i32, i32
  }
  func.func @transform_2(%arg0: i32, %arg1: i32) -> (i32, i32) {
    %c0_i32 = arith.constant 0 : i32
    %c0_i32_0 = arith.constant 0 : i32
    %c0_i32_1 = arith.constant 0 : i32
    return %c0_i32, %c0_i32_0 : i32, i32
  }
  func.func @transform_3(%arg0: i32, %arg1: i32) -> (i32, i32, i32) {
    %c0_i32 = arith.constant 0 : i32
    %c0_i32_0 = arith.constant 0 : i32
    return %arg1, %arg0, %c0_i32 : i32, i32, i32
  }
  func.func @transform_4(%arg0: i32, %arg1: i32) -> (i32, i32, i32) {
    %c0_i32 = arith.constant 0 : i32
    %c0_i32_0 = arith.constant 0 : i32
    return %arg1, %arg0, %c0_i32 : i32, i32, i32
  }
}

</mosaic_0001>

<bundles_post_ra>
// kernel: classifier_forward.1
= control target key start
LH: loop header
LB: loop body
LE: loop exit
PB: predicated region body
PF: predicated region fallthrough
CT: control target
= control target key end

     0   :  { %s1668_s15 = smov 0   ;;  %s1670_s16 = smov 0   ;;  %s2438_s0 = inlined_call_operand.vmem [shape: f32[8,16,256], index: 0, kind: input, shape index: {}]   ;;  %s2439_s1 = inlined_call_operand.vmem [shape: f32[256,128], index: 1, kind: input, shape index: {}]   ;;  %s2440_s2 = inlined_call_operand.vmem [shape: f32[1,128], index: 2, kind: input, shape index: {}]   ;;  %s2441_s3 = inlined_call_operand.vmem [shape: f32[8,16,128], index: 3, kind: output, shape index: {0}]   ;;  %s2442_s4 = inlined_call_operand.vmem [shape: f32[8,16,128], index: 4, kind: output, shape index: {1}]  }
   0x1   :  { %s1672_s17 = smov 0   ;;  %s1674_s18 = smov 0  }
   0x2   :  { %s1676_s19 = smov 0  }
   0x3 LB: > { %s24_s20 = sadd.s32 1, %s1631_s17  ;;  %s27_s21 = sadd.s32 1, %s1635_s18  ;;  %s1639_s19 = sphi %s1676_s19, %s15_s19   ;;  %s1635_s18 = sphi %s1674_s18, %s2616_s18   ;;  %s1631_s17 = sphi %s1672_s17, %s2615_s17   ;;  %s1627_s16 = sphi %s1670_s16, %s2614_s16   ;;  %s1623_s15 = sphi %s1668_s15, %s2613_s15  }
   0x4   : > { %p25_p0 = scmp.ge.s32.totalorder %s24_s20, 8  ;;  %p1336_p1 = scmp.ge.s32.totalorder %s1639_s19, 1 }
   0x5   : > { %p187_p2 = scmp.lt.s32.totalorder %s1639_s19, 17 }
   0x6   : > { %s2618_s20 = smov (%p25_p0, %s24_s20), 0  ;;  %s2620_s21 = smov (!%p25_p0, %s27_s21), %s1635_s18 }
   0x7   : > { %p188_p3 = pnand %p1336_p1, %p187_p2  ;;  %p29_p4 = scmp.ge.s32.totalorder %s2620_s21, 2 }
   0x9   : > { %s2622_s21 = smov (%p29_p4, %s2620_s21), 0  ;;  %191 = sbr.rel (%p188_p3) target bundleno = 358 (0x166), region = 32 }
   0xe   : > { %p228_p5 = scmp.lt.s32.totalorder %s1623_s15, 7  ;;  %p230_p6 = scmp.lt.s32.totalorder %s1627_s16, 1 }
   0xf   : > { %p1344_p7 = scmp.ne.s32.totalorder %s1623_s15, 0 }
  0x10   : > { %s229_s22 = scalar_select %p228_p5, %s1623_s15, 7 }
  0x11   : > { %s2624_s16 = smov (!%p230_p6, %s1627_s16), 1 }
  0x12   : > { %s1338_s23 = sshll.u32 %s229_s22, 2  ;;  %s1340_s24 = sshll.u32 %s229_s22, 1 }
  0x13   : > { %s1337_s25 = sshll.u32 %s2624_s16, 1  ;;  %s242_s26 = sadd.s32 %s1340_s24, %s2624_s16 }
  0x14   : > { %s234_s27 = sadd.s32 %s1338_s23, %s1337_s25  ;;  %s1341_s28 = sshll.u32 %s242_s26, 3 }
  0x15   : > { %s1339_s29 = sshll.u32 %s234_s27, 3  ;;  %s1705_s6 = scalar_lea.vmem %s2441_s3, %s1341_s28 }
  0x16   : > { %s1710_s9 = scalar_lea.vmem %s2438_s0, %s1339_s29  ;;  %s1715_s12 = scalar_lea.vmem %s2442_s4, %s1341_s28 }
  0x17   : > { %256 = sbr.rel (%p1344_p7) target bundleno = 32 (0x20), region = 36 }
  0x1c   : > { %v1641_v0 = vmov 0.0  }
  0x1d   : > { %257 = vst [vmem:[#allocation2] sm:$0xff] %v1641_v0  ;;  %258 = vst [vmem:[#allocation2 + $0x8] sm:$0xff] %v1641_v0 }
  0x1e   : > { %259 = vst [vmem:[#allocation3 + $0x8] sm:$0xff] %v1641_v0  ;;  %260 = vst [vmem:[#allocation3] sm:$0xff] %v1641_v0 }
  0x1f   : > { %261 = vst [vmem:[#allocation4] sm:$0xff] %v1641_v0 }
  0x20 PF: > { %v313_v1 = vld [vmem:[%s2439_s1 + $0xf8] sm:$0xff]  ;;  %v312_v3 = vld [vmem:[%s2439_s1 + $0xf0] sm:$0xff]  ;;  %v311_v8 = vld [vmem:[%s2439_s1 + $0xe8] sm:$0xff] }
  0x21   : > { %v297_v2 = vld [vmem:[%s2439_s1 + $0x78] sm:$0xff]  ;;  %v1727_v4 = vand.u32 4294901760, %v313_v1  ;;  %v1731_v6 = vand.u32 4294901760, %v312_v3  ;;  %v296_v7 = vld [vmem:[%s2439_s1 + $0x70] sm:$0xff]  ;;  %v295_v9 = vld [vmem:[%s2439_s1 + $0x68] sm:$0xff]  ;;  %v1744_v11 = vand.u32 4294901760, %v311_v8 }
  0x22   : > { %v1729_v5 = vand.u32 4294901760, %v297_v2  ;;  %v1742_v10 = vand.u32 4294901760, %v296_v7  ;;  %v1746_v12 = vand.u32 4294901760, %v295_v9  ;;  %v310_v13 = vld [vmem:[%s2439_s1 + $0xe0] sm:$0xff]  ;;  %v309_v15 = vld [vmem:[%s2439_s1 + $0xd8] sm:$0xff]  ;;  %v1775_v21 = vld [vmem:[%s2439_s1 + $0xd0] sm:$0xff] }
  0x23   : > { %v294_v14 = vld [vmem:[%s2439_s1 + $0x60] sm:$0xff]  ;;  %1349 = vmatprep.subr.mxu0 %v1727_v4  ;;  %v1758_v16 = vand.u32 4294901760, %v310_v13  ;;  %v1762_v18 = vand.u32 4294901760, %v309_v15  ;;  %v1765_v19 = vsub.f32 %v313_v1, %v1727_v4  ;;  %v1770_v20 = vld [vmem:[%s2439_s1 + $0x58] sm:$0xff]  ;;  %v1780_v22 = vld [vmem:[%s2439_s1 + $0x50] sm:$0xff]  ;;  %v1790_v25 = vand.u32 4294901760, %v1775_v21 }
  0x24   : > { %v1760_v17 = vand.u32 4294901760, %v294_v14  ;;  %1350 = vmatpush3.msra.mxu0 %v1729_v5  ;;  %v1784_v23 = vand.u32 4294901760, %v1770_v20  ;;  %v1787_v24 = vsub.f32 %v297_v2, %v1729_v5  ;;  %v1793_v26 = vsub.f32 %v312_v3, %v1731_v6  ;;  %v1798_v27 = vld [vmem:[%s2439_s1 + $0xc8] sm:$0xff]  ;;  %v1808_v29 = vld [vmem:[%s2439_s1 + $0xc0] sm:$0xff]  ;;  %v1860_v47 = vld [vmem:[%s2439_s1 + $0xb8] sm:$0xff] }
  0x25   : > { %2521 = vst [vmem:[#allocation6_spill] sm:$0xff] %v1790_v25  ;;  %v1803_v28 = vld [vmem:[%s2439_s1 + $0x48] sm:$0xff]  ;;  %1351 = vmatprep.subr.mxu0 %v1731_v6  ;;  %v2456_v30 = vand.u32 4294901760, %v1765_v19  ;;  %v1813_v31 = vand.u32 4294901760, %v1780_v22  ;;  %v1816_v32 = vsub.f32 %v296_v7, %v1742_v10  ;;  %v1819_v33 = vand.u32 4294901760, %v1798_v27  ;;  %v1833_v38 = vld [vmem:[%s2439_s1 + $0x40] sm:$0xff] }
  0x26   : > { %2520 = vst [vmem:[#allocation5_spill] sm:$0xff] %v1784_v23  ;;  %1352 = vmatpush3.msra.mxu0 %v1742_v10  ;;  %v2455_v34 = vand.u32 4294901760, %v1787_v24  ;;  %v2453_v35 = vand.u32 4294901760, %v1793_v26  ;;  %v1825_v36 = vsub.f32 %v311_v8, %v1744_v11  ;;  %v1828_v37 = vand.u32 4294901760, %v1803_v28  ;;  %v1873_v52 = vld [vmem:[%s2439_s1 + $0x38] sm:$0xff]  ;;  %v1883_v57 = vld [vmem:[%s2439_s1 + $0xb0] sm:$0xff] }
  0x27   : > { %2522 = vst [vmem:[#allocation7_spill] sm:$0xff] %v1813_v31  ;;  %2523 = vst [vmem:[#allocation8_spill] sm:$0xff] %v1819_v33  ;;  %1353 = vmatprep.subr.mxu0 %v1744_v11  ;;  %v549_v39 = vsub.f32 %v1765_v19, %v2456_v30  ;;  %v2452_v40 = vand.u32 4294901760, %v1816_v32  ;;  %v1841_v41 = vsub.f32 %v295_v9, %v1746_v12  ;;  %v1844_v42 = vand.u32 4294901760, %v1808_v29  ;;  %v1898_v62 = vld [vmem:[%s2439_s1 + $0x30] sm:$0xff]  ;;  %v1913_v3 = vld [vmem:[%s2439_s1 + $0xa8] sm:$0xff] }
  0x28   : > { %2524 = vst [vmem:[#allocation9_spill] sm:$0xff] %v1828_v37  ;;  %1354 = vmatpush3.msra.mxu0 %v1746_v12  ;;  %v437_v43 = vsub.f32 %v1787_v24, %v2455_v34  ;;  %v556_v44 = vsub.f32 %v1793_v26, %v2453_v35  ;;  %v2450_v45 = vand.u32 4294901760, %v1825_v36  ;;  %v1855_v46 = vsub.f32 %v310_v13, %v1758_v16  ;;  %v2049_v34 = vld [vmem:[%s2439_s1 + $0x88] sm:$0xff] }
  0x29   : > { %2525 = vst [vmem:[#allocation10_spill] sm:$0xff] %v1844_v42  ;;  %1355 = vmatprep.subr.mxu0 %v1758_v16  ;;  %v550_v48 = vand.u32 4294901760, %v549_v39  ;;  %v444_v49 = vsub.f32 %v1816_v32, %v2452_v40  ;;  %v2448_v50 = vand.u32 4294901760, %v1841_v41  ;;  %v1868_v51 = vand.u32 4294901760, %v1833_v38 }
  0x2a   : > { %1356 = vmatpush3.msra.mxu0 %v1760_v17  ;;  %v438_v53 = vand.u32 4294901760, %v437_v43  ;;  %v557_v54 = vand.u32 4294901760, %v556_v44  ;;  %v563_v55 = vsub.f32 %v1825_v36, %v2450_v45  ;;  %v2447_v56 = vand.u32 4294901760, %v1855_v46  ;;  %v2022_v45 = vld [vmem:[%s2439_s1 + $0x90] sm:$0xff] }
  0x2b   : > { %2526 = vst [vmem:[#allocation11_spill] sm:$0xff] %v1868_v51  ;;  %1357 = vmatprep.subr.mxu0 %v1762_v18  ;;  %1384 = vmatprep.subr.mxu1 %v550_v48  ;;  %v445_v58 = vand.u32 4294901760, %v444_v49  ;;  %v451_v59 = vsub.f32 %v1841_v41, %v2448_v50  ;;  %v1890_v60 = vsub.f32 %v294_v14, %v1760_v17  ;;  %v1893_v61 = vand.u32 4294901760, %v1860_v47  ;;  %v1927_v14 = vld [vmem:[%s2439_s1 + $0x28] sm:$0xff]  ;;  %v2006_v50 = vld [vmem:[%s2439_s1 + $0x18] sm:$0xff] }
  0x2c   : > { %1358 = vmatpush3.msra.mxu0 %v1784_v23  ;;  %1385 = vmatpush3.msra.mxu1 %v438_v53  ;;  %v564_v63 = vand.u32 4294901760, %v563_v55  ;;  %v570_v0 = vsub.f32 %v1855_v46, %v2447_v56  ;;  %v1905_v1 = vsub.f32 %v309_v15, %v1762_v18  ;;  %v1908_v2 = vand.u32 4294901760, %v1873_v52 }
  0x2d   : > { %2527 = vst [vmem:[#allocation12_spill] sm:$0xff] %v1893_v61  ;;  %1359 = vmatprep.subr.mxu0 %v1790_v25  ;;  %1386 = vmatprep.subr.mxu1 %v557_v54  ;;  %v452_v7 = vand.u32 4294901760, %v451_v59  ;;  %v2445_v8 = vand.u32 4294901760, %v1890_v60  ;;  %v1919_v9 = vsub.f32 %v1770_v20, %v1784_v23  ;;  %v1922_v13 = vand.u32 4294901760, %v1883_v57 }
  0x2e   : > { %2528 = vst [vmem:[#allocation13_spill] sm:$0xff] %v1908_v2  ;;  %1360 = vmatpush3.msra.mxu0 %v1813_v31  ;;  %1387 = vmatpush3.msra.mxu1 %v445_v58  ;;  %v571_v15 = vand.u32 4294901760, %v570_v0  ;;  %v2443_v39 = vand.u32 4294901760, %v1905_v1  ;;  %v1933_v43 = vsub.f32 %v1775_v21, %v1790_v25  ;;  %v1936_v20 = vand.u32 4294901760, %v1898_v62  ;;  %v1953_v21 = vld [vmem:[%s2439_s1 + $0xa0] sm:$0xff] }
  0x2f   : > { %2529 = vst [vmem:[#allocation14_spill] sm:$0xff] %v1922_v13  ;;  %1361 = vmatprep.subr.mxu0 %v1819_v33  ;;  %1388 = vmatprep.subr.mxu1 %v564_v63  ;;  %v458_v44 = vsub.f32 %v1890_v60, %v2445_v8  ;;  %v2444_v48 = vand.u32 4294901760, %v1919_v9  ;;  %v1945_v49 = vsub.f32 %v1780_v22, %v1813_v31  ;;  %v1948_v53 = vand.u32 4294901760, %v1913_v3 }
  0x30   : > { %2530 = vst [vmem:[#allocation15_spill] sm:$0xff] %v1936_v20  ;;  %1362 = vmatpush3.msra.mxu0 %v1828_v37  ;;  %1389 = vmatpush3.msra.mxu1 %v452_v7  ;;  %v577_v54 = vsub.f32 %v1905_v1, %v2443_v39  ;;  %v2446_v55 = vand.u32 4294901760, %v1933_v43  ;;  %v1962_v22 = vsub.f32 %v1798_v27, %v1819_v33  ;;  %v1965_v58 = vand.u32 4294901760, %v1927_v14  ;;  %v1979_v27 = vld [vmem:[%s2439_s1 + $0x20] sm:$0xff] }
  0x31   : > { %2531 = vst [vmem:[#allocation16_spill] sm:$0xff] %v1948_v53  ;;  %1363 = vmatprep.subr.mxu0 %v1844_v42  ;;  %1390 = vmatprep.subr.mxu1 %v571_v15  ;;  %v459_v59 = vand.u32 4294901760, %v458_v44  ;;  %v465_v63 = vsub.f32 %v1919_v9, %v2444_v48  ;;  %v2449_v0 = vand.u32 4294901760, %v1945_v49  ;;  %v1974_v7 = vsub.f32 %v1803_v28, %v1828_v37  ;;  %v1992_v28 = vld [vmem:[%s2439_s1 + $0x98] sm:$0xff] }
  0x32   : > { %2532 = vst [vmem:[#allocation17_spill] sm:$0xff] %v1965_v58  ;;  %1364 = vmatpush3.msra.mxu0 %v1868_v51  ;;  %v578_v39 = vand.u32 4294901760, %v577_v54  ;;  %v584_v15 = vsub.f32 %v1933_v43, %v2446_v55  ;;  %v2451_v44 = vand.u32 4294901760, %v1962_v22  ;;  %v1987_v48 = vand.u32 4294901760, %v1953_v21 }
  0x33   : > { %1391 = vmatpush3.msra.mxu1 %v459_v59  ;;  %1365 = vmatprep.subr.mxu0 %v1893_v61  ;;  %v466_v8 = vand.u32 4294901760, %v465_v63  ;;  %v472_v54 = vsub.f32 %v1945_v49, %v2449_v0  ;;  %v2454_v55 = vand.u32 4294901760, %v1974_v7  ;;  %v2001_v56 = vsub.f32 %v1808_v29, %v1844_v42 }
  0x34   : > { %2533 = vst [vmem:[#allocation18_spill] sm:$0xff] %v1987_v48  ;;  %1392 = vmatprep.subr.mxu1 %v578_v39  ;;  %1366 = vmatpush3.msra.mxu0 %v1908_v2  ;;  %v585_v59 = vand.u32 4294901760, %v584_v15  ;;  %v591_v63 = vsub.f32 %v1962_v22, %v2451_v44  ;;  %v2013_v0 = vand.u32 4294901760, %v1979_v27  ;;  %v2017_v29 = vsub.f32 %v1833_v38, %v1868_v51  ;;  %v2035_v38 = vld [vmem:[%s2439_s1 + $0x10] sm:$0xff] }
  0x35   : > { %1393 = vmatpush3.msra.mxu1 %v466_v8  ;;  %1367 = vmatprep.subr.mxu0 %v1922_v13  ;;  %v473_v39 = vand.u32 4294901760, %v472_v54  ;;  %v479_v15 = vsub.f32 %v1974_v7, %v2454_v55  ;;  %v2459_v44 = vand.u32 4294901760, %v2001_v56  ;;  %v2030_v40 = vand.u32 4294901760, %v1992_v28 }
  0x36   : > { %2534 = vst [vmem:[#allocation19_spill] sm:$0xff] %v2013_v0  ;;  %1394 = vmatprep.subr.mxu1 %v585_v59  ;;  %1368 = vmatpush3.msra.mxu0 %v1936_v20  ;;  %v592_v8 = vand.u32 4294901760, %v591_v63  ;;  %v2460_v54 = vand.u32 4294901760, %v2017_v29  ;;  %v2041_v35 = vsub.f32 %v1860_v47, %v1893_v61  ;;  %v2044_v55 = vand.u32 4294901760, %v2006_v50 }
  0x37   : > { %2535 = vst [vmem:[#allocation20_spill] sm:$0xff] %v2030_v40  ;;  %1395 = vmatpush3.msra.mxu1 %v473_v39  ;;  %1369 = vmatprep.subr.mxu0 %v1948_v53  ;;  %v480_v59 = vand.u32 4294901760, %v479_v15  ;;  %v598_v63 = vsub.f32 %v2001_v56, %v2459_v44  ;;  %v2057_v47 = vsub.f32 %v1873_v52, %v1908_v2  ;;  %v2060_v30 = vand.u32 4294901760, %v2022_v45  ;;  %v2077_v52 = vld [vmem:[%s2439_s1 + $0x8] sm:$0xff] }
  0x38   : > { %1396 = vmatprep.subr.mxu1 %v592_v8  ;;  %1370 = vmatpush3.msra.mxu0 %v1965_v58  ;;  %v486_v39 = vsub.f32 %v2017_v29, %v2460_v54  ;;  %v2069_v61 = vsub.f32 %v1883_v57, %v1922_v13  ;;  %v2072_v44 = vand.u32 4294901760, %v2035_v38  ;;  %v2083_v15 = vsub.f32 %v1898_v62, %v1936_v20  ;;  %v2091_v13 = vld [vmem:[%s2439_s1 + $0x80] sm:$0xff] }
  0x39   : > { %2536 = vst [vmem:[#allocation21_spill] sm:$0xff] %v2057_v47  ;;  %1397 = vmatpush3.msra.mxu1 %v480_v59  ;;  %1371 = vmatprep.subr.mxu0 %v1987_v48  ;;  %v599_v8 = vand.u32 4294901760, %v598_v63  ;;  %v2086_v57 = vand.u32 4294901760, %v2049_v34  ;;  %v2539_v2 = vand.u32 4294901760, %v2041_v35  ;;  %v2100_v62 = vsub.f32 %v1913_v3, %v1948_v53  ;;  %v2117_v3 = vld [vmem:[%s2439_s1] sm:$0xff] }
  0x3a   : > { %2537 = vst [vmem:[#allocation22_spill] sm:$0xff] %v2069_v61  ;;  %2538 = vst [vmem:[#allocation23_spill] sm:$0xff] %v2083_v15  ;;  %1372 = vmatpush3.msra.mxu0 %v2013_v0  ;;  %v487_v59 = vand.u32 4294901760, %v486_v39  ;;  %v2479_v54 = vand.u32 4294901760, %v2069_v61  ;;  %v2541_v20 = vand.u32 4294901760, %v2057_v47  ;;  %v2108_v39 = vand.u32 4294901760, %v2077_v52 }
  0x3b   : > { %v605_v63 = vsub.f32 %v2041_v35, %v2539_v2  ;;  %2540 = vst [vmem:[#allocation24_spill] sm:$0xff] %v2100_v62  ;;  %1398 = vmatprep.subr.mxu1 %v599_v8  ;;  %1373 = vmatprep.subr.mxu0 %v2030_v40  ;;  %v2112_v2 = vsub.f32 %v1927_v14, %v1965_v58  ;;  %v2125_v53 = vand.u32 4294901760, %v2091_v13  ;;  %v265_v14 = vld [vmem:[#allocation2 + $0x8] sm:$0xff]  ;;  %v2543_v37 = vand.u32 4294901760, %v2083_v15 }
  0x3c   : > { %v493_v51 = vsub.f32 %v2057_v47, %v2541_v20  ;;  %1399 = vmatpush3.msra.mxu1 %v487_v59  ;;  %1374 = vmatpush3.msra.mxu0 %v2044_v55  ;;  %v612_v20 = vsub.f32 %v2069_v61, %v2479_v54  ;;  %v2134_v33 = vsub.f32 %v1953_v21, %v1987_v48  ;;  %v269_v54 = vld [vmem:[#allocation3] sm:$0xff]  ;;  %v2545_v31 = vand.u32 4294901760, %v2100_v62 }
  0x3d   : > { %2542 = vst [vmem:[#allocation25_spill] sm:$0xff] %v2112_v2  ;;  %v606_v8 = vand.u32 4294901760, %v605_v63  ;;  %1375 = vmatprep.subr.mxu0 %v2060_v30  ;;  %v500_v59 = vsub.f32 %v2083_v15, %v2543_v37  ;;  %v2141_v61 = vand.u32 4294901760, %v2117_v3  ;;  %v2145_v37 = vsub.f32 %v1979_v27, %v2013_v0  ;;  %v263_v63 = vld [vmem:[%s1710_s9 + $0x8] sm:$0xff]  ;;  %v268_v15 = vld [vmem:[#allocation3 + $0x8] sm:$0xff] }
  0x3e   : > { %v494_v58 = vand.u32 4294901760, %v493_v51  ;;  %2544 = vst [vmem:[#allocation26_spill] sm:$0xff] %v2134_v33  ;;  %v613_v42 = vand.u32 4294901760, %v612_v20  ;;  %1376 = vmatpush3.msra.mxu0 %v2072_v44  ;;  %v619_v51 = vsub.f32 %v2100_v62, %v2545_v31  ;;  %v2500_v48 = vand.u32 4294901760, %v2134_v33  ;;  %v264_v62 = vld [vmem:[#allocation2] sm:$0xff] }
  0x3f   : > { %1400 = vmatprep.subr.mxu1 %v606_v8  ;;  %v501_v21 = vand.u32 4294901760, %v500_v59  ;;  %1377 = vmatprep.subr.mxu0 %v2086_v57  ;;  %v2546_v8 = vand.u32 4294901760, %v2112_v2  ;;  %v267_v31 = vmul.f32 0.9, %v265_v14  ;;  %v2513_v27 = vand.u32 4294901760, %v2145_v37 }
  0x40   : > { %1401 = vmatpush3.msra.mxu1 %v494_v58  ;;  %v620_v25 = vand.u32 4294901760, %v619_v51  ;;  %1378 = vmatpush3.msra.mxu0 %v2108_v39  ;;  %v271_v58 = vmul.f32 10.0, %v269_v54  ;;  %v275_v59 = vmul.f32 0.9, %v269_v54  ;;  %v2161_v14 = vsub.f32 %v1992_v28, %v2030_v40 }
  0x41   : > { %v507_v20 = vsub.f32 %v2112_v2, %v2546_v8  ;;  %1402 = vmatprep.subr.mxu1 %v613_v42  ;;  %1379 = vmatprep.subr.mxu0 %v2125_v53  ;;  %v626_v8 = vsub.f32 %v2134_v33, %v2500_v48  ;;  %v277_v2 = vmul.f32 10.0, %v263_v63  ;;  %v262_v42 = vld [vmem:[%s1710_s9] sm:$0xff]  ;;  %v514_v54 = vsub.f32 %v2145_v37, %v2513_v27  ;;  %v2564_v27 = vld [vmem:[#allocation14_spill] sm:$0xff] }
  0x42   : > { %1403 = vmatpush3.msra.mxu1 %v501_v21  ;;  %1380 = vmatpush3.msra.mxu0 %v2141_v61  ;;  %v273_v51 = vadd.f32 %v271_v58, %v267_v31  ;;  %v266_v21 = vmul.f32 0.9, %v264_v62  ;;  %v2508_v63 = vand.u32 4294901760, %v2161_v14  ;;  %v274_v28 = vmul.f32 0.9, %v268_v15 }
  0x43   : > { %v508_v0 = vand.u32 4294901760, %v507_v20  ;;  %1404 = vmatprep.subr.mxu1 %v620_v25  ;;  %v270_v20 = vmul.f32 10.0, %v268_v15  ;;  %v627_v47 = vand.u32 4294901760, %v626_v8  ;;  %v279_v23 = vadd.f32 %v277_v2, %v275_v59  ;;  %1419 = vmatprep.subr.mxu0 %v1765_v19 }
  0x44   : > { %v515_v48 = vand.u32 4294901760, %v514_v54  ;;  %v2170_v40 = vand.u32 4294901760, %v273_v51  ;;  %1190 = vst [vmem:[#allocation2 + $0x8] sm:$0xff] %v273_v51  ;;  %v276_v33 = vmul.f32 10.0, %v262_v42  ;;  %v633_v62 = vsub.f32 %v2161_v14, %v2508_v63 }
  0x45   : > { %1405 = vmatpush3.msra.mxu1 %v508_v0  ;;  %v272_v25 = vadd.f32 %v270_v20, %v266_v21  ;;  %1192 = vst [vmem:[#allocation3] sm:$0xff] %v279_v23  ;;  %v2177_v0 = vsub.f32 %v2006_v50, %v2044_v55  ;;  %v2181_v2 = vsub.f32 %v2022_v45, %v2060_v30 }
  0x46   : > { %2547 = vst [vmem:[#allocation27_spill] sm:$0xff] %v2170_v40  ;;  %1406 = vmatprep.subr.mxu1 %v627_v47  ;;  %v2185_v15 = vsub.f32 %v2035_v38, %v2072_v44  ;;  %v2188_v47 = vsub.f32 %v273_v51, %v2170_v40  ;;  %v278_v23 = vadd.f32 %v276_v33, %v274_v28  ;;  %v634_v45 = vand.u32 4294901760, %v633_v62 }
  0x47   : > { %1407 = vmatpush3.msra.mxu1 %v515_v48  ;;  %v2190_v31 = vand.u32 4294901760, %v272_v25  ;;  %1189 = vst [vmem:[#allocation2] sm:$0xff] %v272_v25  ;;  %v2194_v50 = vsub.f32 %v2049_v34, %v2086_v57  ;;  %658 = vmatprep.mubr.f32.mxu1 %v2170_v40  ;;  %v2507_v58 = vand.u32 4294901760, %v2177_v0  ;;  %v2506_v38 = vand.u32 4294901760, %v2181_v2  ;;  %v2568_v40 = vld [vmem:[#allocation18_spill] sm:$0xff] }
  0x48   : > { %v2505_v48 = vand.u32 4294901760, %v2185_v15  ;;  %v2515_v59 = vand.u32 4294901760, %v2188_v47  ;;  %1191 = vst [vmem:[#allocation3 + $0x8] sm:$0xff] %v278_v23  ;;  %v2207_v34 = vsub.f32 %v2077_v52, %v2108_v39  ;;  %1408 = vmatprep.subr.mxu1 %v634_v45  ;;  %v2220_v21 = vsub.f32 %v2091_v13, %v2125_v53 }
  0x49   : > { %2548 = vst [vmem:[#allocation28_spill] sm:$0xff] %v2190_v31  ;;  %v2202_v33 = vsub.f32 %v272_v25, %v2190_v31  ;;  %v2509_v8 = vand.u32 4294901760, %v2194_v50  ;;  %v521_v42 = vsub.f32 %v2177_v0, %v2507_v58  ;;  %v640_v54 = vsub.f32 %v2181_v2, %v2506_v38 }
  0x4a   : > { %v528_v51 = vsub.f32 %v2185_v15, %v2505_v48  ;;  %v420_v52 = vsub.f32 %v2188_v47, %v2515_v59  ;;  %v2512_v25 = vand.u32 4294901760, %v2207_v34  ;;  %v2511_v48 = vand.u32 4294901760, %v2220_v21  ;;  %v2566_v59 = vld [vmem:[#allocation16_spill] sm:$0xff] }
  0x4b   : > { %v2514_v20 = vand.u32 4294901760, %v2202_v33  ;;  %v647_v28 = vsub.f32 %v2194_v50, %v2509_v8  ;;  %v522_v62 = vand.u32 4294901760, %v521_v42  ;;  %v641_v23 = vand.u32 4294901760, %v640_v54 }
  0x4c   : > { %v529_v45 = vand.u32 4294901760, %v528_v51  ;;  %v421_v38 = vand.u32 4294901760, %v420_v52  ;;  %v535_v63 = vsub.f32 %v2207_v34, %v2512_v25  ;;  %v654_v8 = vsub.f32 %v2220_v21, %v2511_v48  ;;  %v2562_v48 = vld [vmem:[#allocation12_spill] sm:$0xff]  ;;  %v2563_v25 = vld [vmem:[#allocation13_spill] sm:$0xff] }
  0x4d   : > { %v426_v13 = vsub.f32 %v2202_v33, %v2514_v20  ;;  %v648_v58 = vand.u32 4294901760, %v647_v28  ;;  %1409 = vmatpush3.msra.mxu1 %v522_v62  ;;  %v2242_v42 = vsub.f32 %v2117_v3, %v2141_v61  ;;  %v2565_v20 = vld [vmem:[#allocation15_spill] sm:$0xff] }
  0x4e   : > { %422 = vmatprep.mubr.f32.mxu0 %v421_v38  ;;  %1410 = vmatprep.subr.mxu1 %v641_v23  ;;  %v536_v51 = vand.u32 4294901760, %v535_v63  ;;  %v655_v52 = vand.u32 4294901760, %v654_v8  ;;  %v2549_v63 = vld [vmem:[#allocation5_spill] sm:$0xff]  ;;  %v2551_v38 = vld [vmem:[#allocation6_spill] sm:$0xff]  ;;  %v2553_v23 = vld [vmem:[#allocation7_spill] sm:$0xff] }
  0x4f   : > { %v427_v54 = vand.u32 4294901760, %v426_v13  ;;  %1411 = vmatpush3.msra.mxu1 %v529_v45  ;;  %v2510_v28 = vand.u32 4294901760, %v2242_v42  ;;  %v2552_v8 = vld [vmem:[#allocation22_spill] sm:$0xff]  ;;  %v2554_v45 = vld [vmem:[#allocation23_spill] sm:$0xff]  ;;  %v2555_v13 = vld [vmem:[#allocation8_spill] sm:$0xff] }
  0x50   : > { %1412 = vmatprep.subr.mxu1 %v648_v58  ;;  %v2550_v58 = vld [vmem:[#allocation21_spill] sm:$0xff] }
  0x51   : > { %428 = vmatmul.mubr.f32.vlgmr.msra.gmra.mxu0 %v427_v54  ;;  %1413 = vmatpush3.msra.mxu1 %v536_v51  ;;  %v542_v62 = vsub.f32 %v2242_v42, %v2510_v28  ;;  %v2556_v54 = vld [vmem:[#allocation24_spill] sm:$0xff]  ;;  %v2557_v51 = vld [vmem:[#allocation9_spill] sm:$0xff]  ;;  %v2561_v28 = vld [vmem:[#allocation11_spill] sm:$0xff] }
  0x52   : > { %1420 = vmatpush3.msra.mxu0 %v1787_v24  ;;  %1414 = vmatprep.subr.mxu1 %v655_v52  ;;  %v2558_v52 = vld [vmem:[#allocation25_spill] sm:$0xff] }
  0x53   : > { %1421 = vmatprep.subr.mxu0 %v1793_v26  ;;  %v543_v3 = vand.u32 4294901760, %v542_v62  ;;  %795 = vmatprep.mubr.f32.mxu0 %v2188_v47  ;;  %v2559_v62 = vld [vmem:[#allocation10_spill] sm:$0xff] }
  0x54   : > { %1422 = vmatpush3.msra.mxu0 %v1816_v32 }
  0x55   : > { %1423 = vmatprep.subr.mxu0 %v1825_v36  ;;  %1415 = vmatpush3.msra.mxu1 %v543_v3  ;;  %v2560_v3 = vld [vmem:[#allocation26_spill] sm:$0xff] }
  0x56   : > { %1424 = vmatpush3.msra.mxu0 %v1841_v41  ;;  %660 = vmatmul.mubr.f32.vlgmr.msra.gmra.mxu1 %v2190_v31  ;;  %v2567_v31 = vld [vmem:[#allocation17_spill] sm:$0xff] }
  0x57   : > { %1425 = vmatprep.subr.mxu0 %v1855_v46  ;;  %1454 = vmatprep.subr.mxu1 %v1727_v4 }
  0x58   : > { %1426 = vmatpush3.msra.mxu0 %v1890_v60  ;;  %1455 = vmatpush3.msra.mxu1 %v1729_v5 }
  0x59   : > { %1427 = vmatprep.subr.mxu0 %v1905_v1  ;;  %1456 = vmatprep.subr.mxu1 %v1731_v6 }
  0x5a   : > { %1428 = vmatpush3.msra.mxu0 %v1919_v9  ;;  %1457 = vmatpush3.msra.mxu1 %v1742_v10 }
  0x5b   : > { %1429 = vmatprep.subr.mxu0 %v1933_v43  ;;  %1458 = vmatprep.subr.mxu1 %v1744_v11 }
  0x5c   : > { %1430 = vmatpush3.msra.mxu0 %v1945_v49  ;;  %1459 = vmatpush3.msra.mxu1 %v1746_v12 }
  0x5d   : > { %1431 = vmatprep.subr.mxu0 %v1962_v22  ;;  %1460 = vmatprep.subr.mxu1 %v1758_v16 }
  0x5e   : > { %1432 = vmatpush3.msra.mxu0 %v1974_v7  ;;  %1461 = vmatpush3.msra.mxu1 %v1760_v17 }
  0x5f   : > { %1433 = vmatprep.subr.mxu0 %v2001_v56  ;;  %1462 = vmatprep.subr.mxu1 %v1762_v18 }
  0x60   : > { %1434 = vmatpush3.msra.mxu0 %v2017_v29  ;;  %1463 = vmatpush3.msra.mxu1 %v2549_v63 }
  0x61   : > { %1435 = vmatprep.subr.mxu0 %v2041_v35  ;;  %1464 = vmatprep.subr.mxu1 %v2551_v38 }
  0x62   : > { %1436 = vmatpush3.msra.mxu0 %v2550_v58  ;;  %1465 = vmatpush3.msra.mxu1 %v2553_v23 }
  0x63   : > { %1437 = vmatprep.subr.mxu0 %v2552_v8  ;;  %1466 = vmatprep.subr.mxu1 %v2555_v13 }
  0x64   : > { %1438 = vmatpush3.msra.mxu0 %v2554_v45  ;;  %1467 = vmatpush3.msra.mxu1 %v2557_v51 }
  0x65   : > { %1439 = vmatprep.subr.mxu0 %v2556_v54  ;;  %1468 = vmatprep.subr.mxu1 %v2559_v62 }
  0x66   : > { %1440 = vmatpush3.msra.mxu0 %v2558_v52  ;;  %1469 = vmatpush3.msra.mxu1 %v2561_v28 }
  0x67   : > { %1441 = vmatprep.subr.mxu0 %v2560_v3  ;;  %1470 = vmatprep.subr.mxu1 %v2562_v48 }
  0x68   : > { %1442 = vmatpush3.msra.mxu0 %v2145_v37  ;;  %1471 = vmatpush3.msra.mxu1 %v2563_v25  ;;  %v2569_v25 = vld [vmem:[#allocation19_spill] sm:$0xff] }
  0x69   : > { %1443 = vmatprep.subr.mxu0 %v2161_v14  ;;  %1472 = vmatprep.subr.mxu1 %v2564_v27  ;;  %v2570_v27 = vld [vmem:[#allocation20_spill] sm:$0xff] }
  0x6a   : > { %1444 = vmatpush3.msra.mxu0 %v2177_v0  ;;  %1473 = vmatpush3.msra.mxu1 %v2565_v20 }
  0x6b   : > { %1445 = vmatprep.subr.mxu0 %v2181_v2  ;;  %1474 = vmatprep.subr.mxu1 %v2566_v59  ;;  %v2571_v59 = vand.u32 4294901760, %v1765_v19  ;;  %v2575_v19 = vand.u32 4294901760, %v1825_v36  ;;  %v2580_v36 = vand.u32 4294901760, %v2202_v33 }
  0x6c   : > { %1446 = vmatpush3.msra.mxu0 %v2185_v15  ;;  %1475 = vmatpush3.msra.mxu1 %v2567_v31  ;;  %v2572_v31 = vand.u32 4294901760, %v1787_v24  ;;  %v2576_v24 = vand.u32 4294901760, %v1841_v41  ;;  %v2582_v41 = vand.u32 4294901760, %v1919_v9  ;;  %v2597_v9 = vand.u32 4294901760, %v2161_v14  ;;  %v2604_v14 = vld [vmem:[#allocation16_spill] sm:$0xff] }
  0x6d   : > { %1447 = vmatprep.subr.mxu0 %v2194_v50  ;;  %1476 = vmatprep.subr.mxu1 %v2568_v40  ;;  %v2573_v40 = vand.u32 4294901760, %v1793_v26  ;;  %v2577_v26 = vand.u32 4294901760, %v1855_v46  ;;  %v2583_v46 = vand.u32 4294901760, %v1933_v43  ;;  %v2598_v43 = vand.u32 4294901760, %v2177_v0 }
  0x6e   : > { %1448 = vmatpush3.msra.mxu0 %v2207_v34  ;;  %1477 = vmatpush3.msra.mxu1 %v2569_v25  ;;  %v2574_v25 = vand.u32 4294901760, %v1816_v32  ;;  %v2578_v32 = vand.u32 4294901760, %v2188_v47  ;;  %v2605_v0 = vand.u32 4294901760, %v2207_v34  ;;  %v2606_v47 = vld [vmem:[#allocation17_spill] sm:$0xff] }
  0x6f   : > { %1449 = vmatprep.subr.mxu0 %v2220_v21  ;;  %1478 = vmatprep.subr.mxu1 %v2570_v27 }
  0x70   : > { %1450 = vmatpush3.msra.mxu0 %v2242_v42  ;;  %1479 = vmatpush3.msra.mxu1 %v2044_v55 }
  0x71   : > { %798 = vmatmul.mubr.f32.vlgmr.msra.gmra.mxu0 %v2202_v33  ;;  %1489 = vmatprep.subr.mxu0 %v2571_v59  ;;  %v2610_v59 = vld [vmem:[#allocation27_spill] sm:$0xff] }
  0x72   : > { %1490 = vmatpush3.msra.mxu0 %v2572_v31  ;;  %1480 = vmatprep.subr.mxu1 %v2060_v30  ;;  %v2581_v31 = vand.u32 4294901760, %v1905_v1  ;;  %v2585_v1 = vand.u32 4294901760, %v1962_v22  ;;  %v2600_v22 = vand.u32 4294901760, %v2181_v2  ;;  %v2607_v2 = vand.u32 4294901760, %v2220_v21  ;;  %v2611_v33 = vld [vmem:[#allocation19_spill] sm:$0xff] }
  0x73   : > { %1491 = vmatprep.subr.mxu0 %v2573_v40  ;;  %1481 = vmatpush3.msra.mxu1 %v2072_v44  ;;  %v2579_v40 = vand.u32 4294901760, %v1890_v60  ;;  %v2584_v60 = vand.u32 4294901760, %v1945_v49  ;;  %v2599_v49 = vld [vmem:[#allocation13_spill] sm:$0xff] }
  0x74   : > { %1492 = vmatpush3.msra.mxu0 %v2574_v25  ;;  %1482 = vmatprep.subr.mxu1 %v2086_v57 }
  0x75   : > { %1493 = vmatprep.subr.mxu0 %v2575_v19  ;;  %1483 = vmatpush3.msra.mxu1 %v2108_v39 }
  0x76   : > { %1494 = vmatpush3.msra.mxu0 %v2576_v24  ;;  %1484 = vmatprep.subr.mxu1 %v2125_v53 }
  0x77   : > { %1495 = vmatprep.subr.mxu0 %v2577_v26  ;;  %1485 = vmatpush3.msra.mxu1 %v2141_v61 }
  0x78   : > { %902 = vmatprep.mubr.f32.mxu1 %v2578_v32  ;;  %1496 = vmatpush3.msra.mxu0 %v2579_v40  ;;  %v1642_v32 = vmov 0.0  }
  0x79   : > { %906 = vmatmul.mubr.f32.vlgmr.msra.gmra.mxu1 %v2580_v36  ;;  %1497 = vmatprep.subr.mxu0 %v2581_v31 }
  0x7a   : > { %1524 = vmatprep.subr.mxu1 %v1727_v4  ;;  %1498 = vmatpush3.msra.mxu0 %v2582_v41  ;;  %v2586_v4 = vand.u32 4294901760, %v1974_v7  ;;  %v2601_v7 = vld [vmem:[#allocation14_spill] sm:$0xff] }
  0x7b   : > { %1525 = vmatpush3.msra.mxu1 %v1729_v5  ;;  %1499 = vmatprep.subr.mxu0 %v2583_v46  ;;  %v2587_v5 = vand.u32 4294901760, %v2001_v56  ;;  %v2596_v56 = vand.u32 4294901760, %v2145_v37  ;;  %v2603_v37 = vand.u32 4294901760, %v2194_v50  ;;  %v2612_v50 = vld [vmem:[#allocation28_spill] sm:$0xff] }
  0x7c   : > { %1526 = vmatprep.subr.mxu1 %v1731_v6  ;;  %1500 = vmatpush3.msra.mxu0 %v2584_v60  ;;  %v2588_v6 = vand.u32 4294901760, %v2017_v29  ;;  %v2602_v29 = vand.u32 4294901760, %v2185_v15  ;;  %v2609_v15 = vand.u32 4294901760, %v2242_v42 }
  0x7d   : > { %1527 = vmatpush3.msra.mxu1 %v1742_v10  ;;  %1501 = vmatprep.subr.mxu0 %v2585_v1  ;;  %v2589_v10 = vand.u32 4294901760, %v2041_v35  ;;  %v2595_v35 = vand.u32 4294901760, %v2560_v3 }
  0x7e   : > { %1528 = vmatprep.subr.mxu1 %v1744_v11  ;;  %1502 = vmatpush3.msra.mxu0 %v2586_v4  ;;  %v2590_v11 = vand.u32 4294901760, %v2550_v58 }
  0x7f   : > { %1529 = vmatpush3.msra.mxu1 %v1746_v12  ;;  %1503 = vmatprep.subr.mxu0 %v2587_v5  ;;  %v2591_v12 = vand.u32 4294901760, %v2552_v8 }
  0x80   : > { %1530 = vmatprep.subr.mxu1 %v1758_v16  ;;  %1504 = vmatpush3.msra.mxu0 %v2588_v6  ;;  %v2592_v16 = vand.u32 4294901760, %v2554_v45  ;;  %v280_v45 = vld [vmem:[#allocation4] sm:$0xff] }
  0x81   : > { %1531 = vmatpush3.msra.mxu1 %v1760_v17  ;;  %1505 = vmatprep.subr.mxu0 %v2589_v10  ;;  %v2593_v17 = vand.u32 4294901760, %v2556_v54 }
  0x82   : > { %1532 = vmatprep.subr.mxu1 %v1762_v18  ;;  %1506 = vmatpush3.msra.mxu0 %v2590_v11  ;;  %v2594_v18 = vand.u32 4294901760, %v2558_v52 }
  0x83   : > { %1533 = vmatpush3.msra.mxu1 %v2549_v63  ;;  %1507 = vmatprep.subr.mxu0 %v2591_v12 }
  0x84   : > { %1534 = vmatprep.subr.mxu1 %v2551_v38  ;;  %1508 = vmatpush3.msra.mxu0 %v2592_v16 }
  0x85   : > { %1535 = vmatpush3.msra.mxu1 %v2553_v23  ;;  %1509 = vmatprep.subr.mxu0 %v2593_v17 }
  0x86   : > { %1536 = vmatprep.subr.mxu1 %v2555_v13  ;;  %1510 = vmatpush3.msra.mxu0 %v2594_v18 }
  0x87   : > { %1537 = vmatpush3.msra.mxu1 %v2557_v51  ;;  %1511 = vmatprep.subr.mxu0 %v2595_v35  ;;  %v281_v51 = vmul.f32 0.8, %v280_v45 }
  0x88   : > { %1538 = vmatprep.subr.mxu1 %v2559_v62  ;;  %1512 = vmatpush3.msra.mxu0 %v2596_v56 }
  0x89   : > { %1539 = vmatpush3.msra.mxu1 %v2561_v28  ;;  %1513 = vmatprep.subr.mxu0 %v2597_v9  ;;  %v1193_v24 = vadd.f32 5.0, %v281_v51 }
  0x8a   : > { %1540 = vmatprep.subr.mxu1 %v2562_v48  ;;  %1514 = vmatpush3.msra.mxu0 %v2598_v43  ;;  %v2608_v48 = vld [vmem:[#allocation18_spill] sm:$0xff] }
  0x8b   : > { %1541 = vmatpush3.msra.mxu1 %v2599_v49  ;;  %1515 = vmatprep.subr.mxu0 %v2600_v22 }
  0x8c   : > { %1542 = vmatprep.subr.mxu1 %v2601_v7  ;;  %1516 = vmatpush3.msra.mxu0 %v2602_v29 }
  0x8d   : > { %1543 = vmatpush3.msra.mxu1 %v2565_v20  ;;  %1517 = vmatprep.subr.mxu0 %v2603_v37 }
  0x8e   : > { %1544 = vmatprep.subr.mxu1 %v2604_v14  ;;  %1518 = vmatpush3.msra.mxu0 %v2605_v0 }
  0x8f   : > { %1545 = vmatpush3.msra.mxu1 %v2606_v47  ;;  %1519 = vmatprep.subr.mxu0 %v2607_v2 }
  0x90   : > { %1546 = vmatprep.subr.mxu1 %v2608_v48  ;;  %1520 = vmatpush3.msra.mxu0 %v2609_v15 }
  0x91   : > { %1072 = vmatprep.mubr.f32.mxu0 %v2610_v59  ;;  %1547 = vmatpush3.msra.mxu1 %v2611_v33 }
  0x92   : > { %1074 = vmatmul.mubr.f32.vlgmr.msra.gmra.mxu0 %v2612_v50  ;;  %1548 = vmatprep.subr.mxu1 %v2570_v27 }
  0x93   : > { %1176 = vmatprep.mubr.f32.mxu1 %v2610_v59  ;;  %1549 = vmatpush3.msra.mxu1 %v2044_v55 }
  0x94   : > { %1550 = vmatprep.subr.mxu1 %v2060_v30  ;;  %v1345_v30 = vld [vmem:[%s2440_s2] ss:$0 sm:$0xff] }
  0x95   : > { %1551 = vmatpush3.msra.mxu1 %v2072_v44 }
  0x96   : > { %1552 = vmatprep.subr.mxu1 %v2086_v57 }
  0x97   : > { %1553 = vmatpush3.msra.mxu1 %v2108_v39 }
  0x98   : > { %1554 = vmatprep.subr.mxu1 %v2125_v53 }
  0x99   : > { %1555 = vmatpush3.msra.mxu1 %v2141_v61 }
  0x9a   : > { %1178 = vmatmul.mubr.f32.vlgmr.msra.gmra.mxu1 %v2612_v50 }
 0x111   : > { %v1381_v34 = vpop.f32.mrf.mxu0 }
 0x113   : > { %v1382_v27 = vpop.f32.mrf.mxu0 }
 0x114   : > { %v1383_v55 = vadd.f32 %v1382_v27, %v1381_v34 }
 0x116   : > { %v1416_v21 = vpop.f32.mrf.mxu1  ;;  %v430_v39 = vadd.f32 %v1383_v55, %v1345_v30 }
 0x118   : > { %v1417_v25 = vpop.f32.mrf.mxu1 }
 0x119   : > { %v1418_v28 = vadd.f32 %v1417_v25, %v1416_v21 }
 0x11b   : > { %v662_v58 = vadd.f32 %v1418_v28, %v430_v39 }
 0x131   : > { %v1451_v20 = vpop.f32.mrf.mxu0 }
 0x133   : > { %v1452_v44 = vpop.f32.mrf.mxu0 }
 0x134   : > { %v1453_v63 = vadd.f32 %v1452_v44, %v1451_v20 }
 0x136   : > { %v800_v8 = vadd.f32 %v1453_v63, %v662_v58 }
 0x139   : > { %v1486_v57 = vpop.f32.mrf.mxu1 }
 0x13b   : > { %v1487_v53 = vpop.f32.mrf.mxu1 }
 0x13c   : > { %v1488_v38 = vadd.f32 %v1487_v53, %v1486_v57 }
 0x13e   : > { %v908_v54 = vadd.f32 %v1488_v38, %v800_v8 }
 0x152   : > { %v1521_v42 = vpop.f32.mrf.mxu0 }
 0x154   : > { %v1522_v61 = vpop.f32.mrf.mxu0 }
 0x155   : > { %v1523_v23 = vadd.f32 %v1522_v61, %v1521_v42 }
 0x157   : > { %v1076_v62 = vadd.f32 %v1523_v23, %v908_v54 }
 0x15a   : > { %v1556_v13 = vpop.f32.mrf.mxu1 }
 0x15c   : > { %v1557_v52 = vpop.f32.mrf.mxu1 }
 0x15d   : > { %v1558_v3 = vadd.f32 %v1557_v52, %v1556_v13 }
 0x15f   : > { %v1180_v19 = vadd.f32 %v1558_v3, %v1076_v62 }
 0x161   : > { %v1183_v26 = vsub.f32 %v1180_v19, %v281_v51 }
 0x163   : > { %vm1184_vm0 = vcmp.ge.f32.partialorder %v1183_v26, 0.1  ;;  %1188 = vst [vmem:[%s1715_s12] sm:$0xff] %v1183_v26 }
 0x164   : > { %v1346_v40 = vsel %vm1184_vm0, 1.0, %v1642_v32  ;;  %v1194_v36 = vsel %vm1184_vm0, %v1193_v24, %v281_v51 }
 0x165   : > { %1187 = vst [vmem:[%s1705_s6] sm:$0xff] %v1346_v40  ;;  %1195 = vst [vmem:[#allocation4] sm:$0xff] %v1194_v36 }
 0x166 PF: > { %s15_s19 = sadd.s32 1, %s1639_s19   ;;  %s2613_s15 = smov %s1631_s17 }
 0x167   : > { %p12_p8 = scmp.ge.s32.totalorder %s15_s19, 18   ;;  %s2614_s16 = smov %s1635_s18 }
 0x168   : > { %s2615_s17 = smov %s2618_s20  ;;  %s2616_s18 = smov %s2622_s21 }
 0x169   :  { %14 = sbr.rel (!%p12_p8) target bundleno = 3 (0x3), region = 78 }

</bundles_post_ra>
